<compile_context>
chip_gen: v5e
topology: v5e:2x2
jax: 0.10.0
libtpu: 0.0.40
codegen_flags: <defaults>
</compile_context>

<pallas_src>
import functools
import math

import jax
import jax.numpy as jnp
from jax.experimental import pallas as pl
from jax.experimental.pallas import tpu as pltpu


# ----------------------------------------------------------------------------
# Pallas kernel: streaming k-nearest-neighbour indices
# ----------------------------------------------------------------------------
def _knn_kernel(x_ref, q_ref, idx_ref, topv_ref, topi_ref, *, n_k, pad_p):
    """One (batch, query-tile, point-chunk) grid step.

    x_ref   : (1, TP, D)  database point chunk, channels-last (P on sublanes)
    q_ref   : (1, D, TS)  query tile, channels-first (S lane-dense)
    idx_ref : (1, k, TS)  int32 output, row 0 = nearest neighbour
    topv_ref/topi_ref : (k, TS) running top-k value / index accumulators (VMEM),
                        carried across the point-chunk ("arbitrary") grid axis.
    n_k     : static k.
    pad_p   : static number of zero-padded database rows (last chunk only).
    """
    p_step = pl.program_id(2)
    n_chunks = pl.num_programs(2)

    @pl.when(p_step == 0)
    def _init():
        topv_ref[...] = jnp.full(topv_ref.shape, -jnp.inf, topv_ref.dtype)
        topi_ref[...] = jnp.zeros(topi_ref.shape, topi_ref.dtype)

    xt = x_ref[0]                                   # (TP, D), no in-kernel transpose
    q = q_ref[0]                                    # (D, TS)
    tp, d = xt.shape
    ts = q.shape[1]

    # Negative squared distance up to the per-query -||q||^2 constant (cannot
    # change the ranking over points, so it is dropped).
    if d <= 8:
        # Small spatial dims (2/3): accumulate -(x_j - q_j)^2 on the VPU.
        neg = None
        for j in range(d):
            diff = xt[:, j:j + 1].astype(jnp.float32) - q[j:j + 1, :].astype(jnp.float32)
            sq = diff * diff
            neg = -sq if neg is None else neg - sq                      # (TP, TS)
    else:
        # Wide feature dims: contract D on the MXU with f32 accumulation.
        inner = jax.lax.dot_general(xt, q, (((1,), (0,)), ((), ())),
                                    preferred_element_type=jnp.float32)  # (TP, TS)
        xf = xt.astype(jnp.float32)
        xx = jnp.sum(xf * xf, axis=1, keepdims=True)                     # (TP, 1)
        neg = inner - 0.5 * xx          # == (2*x.q - ||x||^2)/2, same argsort

    if pad_p > 0:
        # Only the last chunk carries padded rows; knock them out by row index
        # using a cheap (TP, 1) mask.
        limit = jnp.where(p_step == n_chunks - 1, tp - pad_p, tp)
        col_id = jax.lax.broadcasted_iota(jnp.int32, (tp, 1), 0)
        neg = jnp.where(col_id < limit, neg, -jnp.inf)

    base = p_step * tp
    big = jnp.int32(2 ** 30)
    row_ids = jax.lax.broadcasted_iota(jnp.int32, (tp, ts), 0)   # local ids, no +base pass

    if n_k == 1:
        # Running argmax: no pool, no selection loop.
        best = jnp.max(neg, axis=0, keepdims=True)                               # (1, TS)
        sel = jnp.min(jnp.where(neg == best, row_ids, big),
                      axis=0, keepdims=True) + base                              # (1, TS)
        prev_v = topv_ref[...]
        prev_i = topi_ref[...]
        better = best > prev_v          # strict: ties keep the earlier (lower) index
        topv_ref[...] = jnp.where(better, best, prev_v)
        topi_ref[...] = jnp.where(better, sel, prev_i)
    else:
        # 1) chunk-local top-k on the aligned (TP, TS) tile.
        vals = neg
        chunk_v, chunk_i = [], []
        for i in range(n_k):
            best = jnp.max(vals, axis=0, keepdims=True)                          # (1, TS)
            sel = jnp.min(jnp.where(vals == best, row_ids, big),
                          axis=0, keepdims=True)                                 # (1, TS)
            chunk_v.append(best)
            chunk_i.append(sel + base)   # +base only on the selected rows
            if i + 1 < n_k:
                # Mask exactly the selected row so duplicate-distance points are
                # kept (torch.topk returns both copies of a tie).
                vals = jnp.where(row_ids == sel, -jnp.inf, vals)

        # 2) merge the (k, TS) chunk result with the (k, TS) accumulator via a
        #    tiny (2k, TS) pool; pool ids are unique (disjoint chunk id ranges).
        pool_v = jnp.concatenate([topv_ref[...]] + chunk_v, axis=0)              # (2k, TS)
        pool_i = jnp.concatenate([topi_ref[...]] + chunk_i, axis=0)
        for i in range(n_k):
            best = jnp.max(pool_v, axis=0, keepdims=True)
            sel = jnp.min(jnp.where(pool_v == best, pool_i, big),
                          axis=0, keepdims=True)
            topv_ref[i:i + 1, :] = best
            topi_ref[i:i + 1, :] = sel
            if i + 1 < n_k:
                pool_v = jnp.where(pool_i == sel, -jnp.inf, pool_v)

    @pl.when(p_step == n_chunks - 1)
    def _finalize():
        idx_ref[0] = topi_ref[...]       # (k, TS), S lane-dense -> unmasked stores


def _round_up(n, m):
    return ((n + m - 1) // m) * m


def _pick_tile(n, candidates):
    for t in candidates:
        if n % t == 0:
            return t
    return n


def pallas_knn(x_feat, q_feat, k):
    """x_feat: (B, D, P) database, q_feat: (B, D, S) queries (torch layout).
    Returns (B, k, S) int32 indices into P, nearest first.
    Equivalent to the PyTorch `knn(x_feat, q_feat, k)` with dilation=1
    (exact-distance ties broken by the smallest point index)."""
    B, D, P = x_feat.shape
    S = q_feat.shape[2]
    assert q_feat.shape[0] == B and q_feat.shape[1] == D
    assert D >= 1, "KNN feature dimension must be >= 1"
    assert 1 <= k <= P
    assert P < 2 ** 30                       # headroom for the int32 id sentinel

    # Database goes channels-last so the point axis lands on sublanes (one cheap
    # one-time XLA transpose instead of a per-chunk in-kernel relayout).
    x_pts = jnp.transpose(x_feat, (0, 2, 1))          # (B, P, D)

    # Point chunk capped at 512: bounded VMEM working set on every generation
    # (v7x has only 64 MiB/TC); the kernel is selection-bound, so the extra
    # grid steps are essentially free.
    tp = min(512, _round_up(P, 8))
    p_padded = _round_up(P, tp)
    assert k <= tp
    if p_padded > P:
        x_pts = jnp.pad(x_pts, ((0, 0), (0, p_padded - P), (0, 0)))

    # Lane-dense query tiles: pad S up to a multiple of 128, slice off at the end.
    s_padded = _round_up(S, 128)
    q_p = q_feat if s_padded == S else jnp.pad(
        q_feat, ((0, 0), (0, 0), (0, s_padded - S)))
    ts = _pick_tile(s_padded, (512, 256, 128))
    # Keep the "parallel" grid extent >= 2 when possible (megacore / 2-TC v7x).
    if B * (s_padded // ts) < 2 and s_padded >= 256:
        ts = s_padded // 2 if (s_padded // 2) % 128 == 0 else 128

    grid = (B, s_padded // ts, p_padded // tp)
    kernel = functools.partial(_knn_kernel, n_k=k, pad_p=p_padded - P)

    idx = pl.pallas_call(
        kernel,
        out_shape=jax.ShapeDtypeStruct((B, k, s_padded), jnp.int32),
        grid=grid,
        in_specs=[
            pl.BlockSpec((1, tp, D), lambda b, s, p: (b, p, 0)),
            pl.BlockSpec((1, D, ts), lambda b, s, p: (b, 0, s)),
        ],
        out_specs=pl.BlockSpec((1, k, ts), lambda b, s, p: (b, 0, s)),
        scratch_shapes=[
            pltpu.VMEM((k, ts), jnp.float32),   # running top-k values
            pltpu.VMEM((k, ts), jnp.int32),     # running top-k indices
        ],
        compiler_params=pltpu.CompilerParams(
            dimension_semantics=("parallel", "parallel", "arbitrary"),
            vmem_limit_bytes=32 * 1024 * 1024),
    )(x_pts, q_p)

    return idx[:, :, :S]


# ----------------------------------------------------------------------------
# Glue (pure JAX): gather + mesh construction, mirroring the PyTorch code
# ----------------------------------------------------------------------------
def gether_neibour(X, indx, sample_n, neigh):
    """X: (B, C, P), indx: (B, neigh, sample_n) -> (B, sample_n, neigh, C).
    Reproduces torch's exact view/flatten sequence, including its reinterleaving
    of the (neighbour, sample) order when reshaping to (sample_n, neigh)."""
    B, C, P = X.shape
    Xt = jnp.transpose(X, (0, 2, 1))                           # (B, P, C)
    flat = indx.reshape(B, -1)                                 # row-major (neigh, sample_n)
    feat = jnp.take_along_axis(Xt, flat[:, :, None], axis=1)   # (B, neigh*sample_n, C)
    return feat.reshape(B, sample_n, neigh, C)                 # torch .view semantics


def dynamic_sampling_m(x, s_num, k):
    """JAX/Pallas port of Dynamic_sampling_M(k).forward(x, s_num)."""
    B, C, P = x.shape

    if s_num <= P:
        get_neighbour = s_num
        length = math.ceil(math.sqrt(get_neighbour))
        # The original torch .view() requires length*length == s_num (perfect square).
        assert length * length == s_num, "s_num must be a perfect square (as in the reference)"

        mesh = jnp.arange(length, dtype=jnp.float32) / float(length)
        mesh01 = jnp.tile(mesh[None, :], (length, 1)).reshape(1, 1, length * length)
        mesh02 = jnp.tile(mesh[:, None], (1, length)).reshape(1, 1, length * length)
        mesh = jnp.concatenate([mesh01, mesh02], axis=1)          # (1, 2, s_num)
        point_sample = jnp.tile(mesh, (B, 1, 1))                  # (B, 2, s_num)

        point_x = x[:, :2, :]                                     # (B, 2, P)
        min_x = jnp.min(point_x, axis=2, keepdims=True)
        max_x = jnp.max(point_x, axis=2, keepdims=True)
        point_sample = point_sample * (max_x - min_x) + min_x     # (B, 2, s_num)

        indx = pallas_knn(point_x, point_sample, 1)               # (B, 1, s_num), k==1 fast path
        select_point = gether_neibour(x, indx, get_neighbour, 1)  # (B, s_num, 1, C)
        select_point = jnp.transpose(select_point[:, :, 0, :], (0, 2, 1))  # (B, C, s_num)
    else:
        # TODO(synk): s_num > P branch uses torch's global RNG (rand + sort) for random
        # oversampling; not exercised here and left unimplemented.
        raise NotImplementedError("s_num > P branch not implemented")

    if C == 5:
        indx = pallas_knn(x[:, :3, :], select_point[:, :3, :], k)     # (B, k, s_num)
    else:
        # Same behaviour as the reference (degenerate if C < 5; kernel asserts D >= 1).
        indx = pallas_knn(x[:, 5:, :], select_point[:, 5:, :], k)     # (B, k, s_num)

    assert select_point.shape[2] == s_num
    # TODO(synk): gather kept as an XLA take_along_axis rather than fused into the kernel.
    feature = gether_neibour(x, indx, s_num, k)                       # (B, s_num, k, C)
    return jnp.transpose(feature, (0, 3, 1, 2))                       # (B, C, s_num, k)


# ----------------------------------------------------------------------------
# Example run + light numerical sanity checks
# ----------------------------------------------------------------------------
def _check_knn(xdb, qq, kk):
    """Compare neighbour *distances* against a jnp reference (robust to tie
    index permutations)."""
    idx = pallas_knn(xdb, qq, kk)                                       # (B, kk, S)
    d2 = jnp.sum((xdb[:, :, :, None] - qq[:, :, None, :]) ** 2, axis=1)  # (B, P, S)
    got = jnp.take_along_axis(d2, idx, axis=1)                          # (B, kk, S)
    ref = -jax.lax.top_k(-jnp.transpose(d2, (0, 2, 1)), kk)[0]          # (B, S, kk)
    ref = jnp.transpose(ref, (0, 2, 1))                                 # (B, kk, S)
    assert jnp.allclose(got, ref, rtol=1e-5, atol=1e-5)


if __name__ == "__main__":
    key = jax.random.PRNGKey(0)
    k_x, k_db, k_q = jax.random.split(key, 3)

    # Module-level example (C == 5 -> second KNN over the first 3 channels).
    B, C, P = 2, 5, 64
    s_num, k = 16, 4
    x = jax.random.normal(k_x, (B, C, P), dtype=jnp.float32)

    out = dynamic_sampling_m(x, s_num, k)
    out = jax.block_until_ready(out)
    assert out.shape == (B, C, s_num, k), out.shape
    assert out.dtype == jnp.float32

    # Sanity-check the KNN kernel itself: single-chunk case and a multi-chunk
    # case with P/S padding (exercises the streaming accumulator merge).
    _check_knn(x[:, :3, :], x[:, :3, :s_num], 4)
    xdb_big = jax.random.normal(k_db, (2, 3, 1200), dtype=jnp.float32)
    q_big = jax.random.normal(k_q, (2, 3, 200), dtype=jnp.float32)
    _check_knn(xdb_big, q_big, 6)

    print("KERNEL_OK")
</pallas_src>

<mosaic_0001>
module attributes {stable_mosaic.version = 11 : i64} {
  func.func @_knn_kernel(%arg0: i32, %arg1: i32, %arg2: i32, %arg3: memref<1x64x2xf32, #tpu.memory_space<vmem>>, %arg4: memref<1x2x128xf32, #tpu.memory_space<vmem>>, %arg5: memref<1x1x128xi32, #tpu.memory_space<vmem>>, %arg6: memref<1x128xf32, #tpu.memory_space<vmem>>, %arg7: memref<1x128xi32, #tpu.memory_space<vmem>>) attributes {dimension_semantics = [#tpu.dimension_semantics<parallel>, #tpu.dimension_semantics<parallel>, #tpu.dimension_semantics<arbitrary>], iteration_bounds = array<i64: 2, 1, 1>, scalar_prefetch = 0 : i64, scratch_operands = 2 : i64, tpu.core_type = #tpu.core_type<tc>, window_params = [{transform_indices = @transform_0, window_bounds = array<i64: 1, 64, 2>}, {transform_indices = @transform_1, window_bounds = array<i64: 1, 2, 128>}, {transform_indices = @transform_2, window_bounds = array<i64: 1, 1, 128>}]} {
    %c0_i32 = arith.constant 0 : i32
    %0 = arith.cmpi eq, %arg2, %c0_i32 : i32
    %1 = arith.extui %0 : i1 to i32
    %c0_i32_0 = arith.constant 0 : i32
    %2 = arith.cmpi ne, %1, %c0_i32_0 : i32
    scf.if %2 {
      %cst_18 = arith.constant 0xFF800000 : f32
      %44 = vector.broadcast %cst_18 : f32 to vector<1x128xf32>
      %c0_19 = arith.constant 0 : index
      %c0_20 = arith.constant 0 : index
      %45 = vector.load %arg6[%c0_19, %c0_20] : memref<1x128xf32, #tpu.memory_space<vmem>>, vector<1x128xf32>
      tpu.vector_store %arg6[%c0_19, %c0_20], %44 {strides = array<i32>} : memref<1x128xf32, #tpu.memory_space<vmem>>, vector<1x128xf32>,
      %c0_i32_21 = arith.constant 0 : i32
      %46 = vector.broadcast %c0_i32_21 : i32 to vector<1x128xi32>
      %c0_22 = arith.constant 0 : index
      %c0_23 = arith.constant 0 : index
      %47 = vector.load %arg7[%c0_22, %c0_23] : memref<1x128xi32, #tpu.memory_space<vmem>>, vector<1x128xi32>
      tpu.vector_store %arg7[%c0_22, %c0_23], %46 {strides = array<i32>} : memref<1x128xi32, #tpu.memory_space<vmem>>, vector<1x128xi32>,
    } else {
    }
    %c0 = arith.constant 0 : index
    %c0_1 = arith.constant 0 : index
    %c0_2 = arith.constant 0 : index
    %3 = vector.load %arg3[%c0, %c0_1, %c0_2] : memref<1x64x2xf32, #tpu.memory_space<vmem>>, vector<1x64x2xf32>
    %4 = vector.shape_cast %3 : vector<1x64x2xf32> to vector<64x2xf32>
    %c0_3 = arith.constant 0 : index
    %c0_4 = arith.constant 0 : index
    %c0_5 = arith.constant 0 : index
    %5 = vector.load %arg4[%c0_3, %c0_4, %c0_5] : memref<1x2x128xf32, #tpu.memory_space<vmem>>, vector<1x2x128xf32>
    %6 = vector.shape_cast %5 : vector<1x2x128xf32> to vector<2x128xf32>
    %7 = vector.extract_strided_slice %4 {offsets = [0, 0], sizes = [64, 1], strides = [1, 1]} : vector<64x2xf32> to vector<64x1xf32>
    %8 = vector.extract_strided_slice %6 {offsets = [0, 0], sizes = [1, 128], strides = [1, 1]} : vector<2x128xf32> to vector<1x128xf32>
    %9 = vector.broadcast %7 : vector<64x1xf32> to vector<64x128xf32>
    %10 = vector.broadcast %8 : vector<1x128xf32> to vector<64x128xf32>
    %11 = arith.subf %9, %10 : vector<64x128xf32>
    %12 = arith.mulf %11, %11 : vector<64x128xf32>
    %cst = arith.constant 0.000000e+00 : f32
    %13 = vector.broadcast %cst : f32 to vector<64x128xf32>
    %14 = arith.subf %13, %12 : vector<64x128xf32>
    %15 = vector.extract_strided_slice %4 {offsets = [0, 1], sizes = [64, 1], strides = [1, 1]} : vector<64x2xf32> to vector<64x1xf32>
    %16 = vector.extract_strided_slice %6 {offsets = [1, 0], sizes = [1, 128], strides = [1, 1]} : vector<2x128xf32> to vector<1x128xf32>
    %17 = vector.broadcast %15 : vector<64x1xf32> to vector<64x128xf32>
    %18 = vector.broadcast %16 : vector<1x128xf32> to vector<64x128xf32>
    %19 = arith.subf %17, %18 : vector<64x128xf32>
    %20 = arith.mulf %19, %19 : vector<64x128xf32>
    %21 = arith.subf %14, %20 : vector<64x128xf32>
    %c64_i32 = arith.constant 64 : i32
    %22 = arith.muli %arg2, %c64_i32 : i32
    %23 = tpu.iota {dimensions = array<i32: 0>} : vector<64x128xi32>
    %cst_6 = arith.constant dense<0xFF800000> : vector<128xf32>
    %24 = vector.multi_reduction <maximumf>, %21, %cst_6 [0] : vector<64x128xf32> to vector<128xf32>
    %25 = vector.shape_cast %24 : vector<128xf32> to vector<1x128xf32>
    %26 = vector.broadcast %25 : vector<1x128xf32> to vector<64x128xf32>
    %27 = arith.cmpf oeq, %21, %26 : vector<64x128xf32>
    %c1073741824_i32 = arith.constant 1073741824 : i32
    %28 = vector.broadcast %c1073741824_i32 : i32 to vector<64x128xi32>
    %29 = arith.select %27, %23, %28 : vector<64x128xi1>, vector<64x128xi32>
    %cst_7 = arith.constant dense<2147483647> : vector<128xi32>
    %30 = vector.multi_reduction <minsi>, %29, %cst_7 [0] : vector<64x128xi32> to vector<128xi32>
    %31 = vector.shape_cast %30 : vector<128xi32> to vector<1x128xi32>
    %32 = vector.broadcast %22 : i32 to vector<1x128xi32>
    %33 = arith.addi %31, %32 : vector<1x128xi32>
    %c0_8 = arith.constant 0 : index
    %c0_9 = arith.constant 0 : index
    %34 = vector.load %arg6[%c0_8, %c0_9] : memref<1x128xf32, #tpu.memory_space<vmem>>, vector<1x128xf32>
    %c0_10 = arith.constant 0 : index
    %c0_11 = arith.constant 0 : index
    %35 = vector.load %arg7[%c0_10, %c0_11] : memref<1x128xi32, #tpu.memory_space<vmem>>, vector<1x128xi32>
    %36 = arith.cmpf ogt, %25, %34 : vector<1x128xf32>
    %37 = arith.select %36, %25, %34 : vector<1x128xi1>, vector<1x128xf32>
    %c0_12 = arith.constant 0 : index
    %c0_13 = arith.constant 0 : index
    %38 = vector.load %arg6[%c0_12, %c0_13] : memref<1x128xf32, #tpu.memory_space<vmem>>, vector<1x128xf32>
    tpu.vector_store %arg6[%c0_12, %c0_13], %37 {strides = array<i32>} : memref<1x128xf32, #tpu.memory_space<vmem>>, vector<1x128xf32>,
    %39 = arith.select %36, %33, %35 : vector<1x128xi1>, vector<1x128xi32>
    %c0_14 = arith.constant 0 : index
    %c0_15 = arith.constant 0 : index
    %40 = vector.load %arg7[%c0_14, %c0_15] : memref<1x128xi32, #tpu.memory_space<vmem>>, vector<1x128xi32>
    tpu.vector_store %arg7[%c0_14, %c0_15], %39 {strides = array<i32>} : memref<1x128xi32, #tpu.memory_space<vmem>>, vector<1x128xi32>,
    %c0_i32_16 = arith.constant 0 : i32
    %41 = arith.cmpi eq, %arg2, %c0_i32_16 : i32
    %42 = arith.extui %41 : i1 to i32
    %c0_i32_17 = arith.constant 0 : i32
    %43 = arith.cmpi ne, %42, %c0_i32_17 : i32
    scf.if %43 {
      %c0_18 = arith.constant 0 : index
      %c0_19 = arith.constant 0 : index
      %44 = vector.load %arg7[%c0_18, %c0_19] : memref<1x128xi32, #tpu.memory_space<vmem>>, vector<1x128xi32>
      %c0_20 = arith.constant 0 : index
      %c0_21 = arith.constant 0 : index
      %c0_22 = arith.constant 0 : index
      %45 = vector.load %arg5[%c0_20, %c0_21, %c0_22] : memref<1x1x128xi32, #tpu.memory_space<vmem>>, vector<1x1x128xi32>
      %46 = vector.shape_cast %45 : vector<1x1x128xi32> to vector<1x128xi32>
      %47 = vector.shape_cast %44 : vector<1x128xi32> to vector<1x1x128xi32>
      tpu.vector_store %arg5[%c0_20, %c0_21, %c0_22], %47 {strides = array<i32>} : memref<1x1x128xi32, #tpu.memory_space<vmem>>, vector<1x1x128xi32>,
    } else {
    }
    return
  }
  func.func @transform_0(%arg0: i32, %arg1: i32, %arg2: i32) -> (i32, i32, i32) {
    %c0_i32 = arith.constant 0 : i32
    %c0_i32_0 = arith.constant 0 : i32
    return %arg0, %arg2, %c0_i32 : i32, i32, i32
  }
  func.func @transform_1(%arg0: i32, %arg1: i32, %arg2: i32) -> (i32, i32, i32) {
    %c0_i32 = arith.constant 0 : i32
    %c0_i32_0 = arith.constant 0 : i32
    return %arg0, %c0_i32, %arg1 : i32, i32, i32
  }
  func.func @transform_2(%arg0: i32, %arg1: i32, %arg2: i32) -> (i32, i32, i32) {
    %c0_i32 = arith.constant 0 : i32
    %c0_i32_0 = arith.constant 0 : i32
    return %arg0, %c0_i32, %arg1 : i32, i32, i32
  }
}

</mosaic_0001>

<bundles_post_ra>
// kernel: tpu_custom_call.1
= control target key start
LH: loop header
LB: loop body
LE: loop exit
PB: predicated region body
PF: predicated region fallthrough
CT: control target
= control target key end

     0   :  { %7 = vsyncpa [#allocation5], 0  ;;  %s800_s0 = inlined_call_operand.vmem [shape: f32[2,64,2], index: 0, kind: input, shape index: {}]   ;;  %s801_s1 = inlined_call_operand.vmem [shape: f32[2,2,128], index: 1, kind: input, shape index: {}]   ;;  %s802_s2 = inlined_call_operand.hbm [shape: s32[2,1,128], index: 2, kind: output, shape index: {}]  }
   0x1   :  { %9 = vsyncpa [#allocation5 + $0x1], 0  ;;  %s694_s9 = smov 0   ;;  %s696_s10 = smov 0  }
   0x2   :  { %s698_s11 = smov 0   ;;  %s700_s12 = smov 0  }
   0x3   :  { %s702_s13 = smov 0   ;;  %s704_s14 = smov 0  }
   0x4 LB: > { %s521_s15 = sadd.s32 4294967295, %s674_s14   ;;  %s522_s16 = sadd.s32 4294967294, %s674_s14   ;;  %s674_s14 = sphi %s704_s14, %s15_s14   ;;  %s670_s13 = sphi %s702_s13, %s809_s13   ;;  %s666_s12 = sphi %s700_s12, %s808_s12   ;;  %s662_s11 = sphi %s698_s11, %s807_s11   ;;  %s658_s10 = sphi %s696_s10, %s806_s10   ;;  %s654_s9 = sphi %s694_s9, %s805_s9  }
   0x5   : > { %s34_s17 = sadd.s32 1, %s670_s13  ;;  %s99_s18 = sadd.s32 1, %s662_s11 }
   0x6   : > { %p36_p0 = scmp.ge.s32.totalorder %s34_s17, 2  ;;  %p109_p1 = scmp.ne.s32.totalorder %s662_s11, %s658_s10 }
   0x7   : > { %p110_p2 = scmp.eq.s32.totalorder %s521_s15, 1  ;;  %p115_p3 = scmp.ne.s32.totalorder %s658_s10, %s654_s9 }
   0x8   : > { %s811_s17 = smov (%p36_p0, %s34_s17), 0  ;;  %p116_p5 = scmp.eq.s32.totalorder %s522_s16, 1 }
   0x9   : > { %p734_p4 = por %p110_p2, %p109_p1  ;;  %s94_s20 = ssub.s32 %s670_s13, %s811_s17 }
   0xa   : > { %p525_p6 = scmp.ge.s32.totalorder %s674_s14, 1  ;;  %p97_p7 = scmp.eq.s32.totalorder %s94_s20, 0 }
   0xb   : > { %p741_p8 = por %p116_p5, %p115_p3  ;;  %p157_p9 = scmp.lt.s32.totalorder %s674_s14, 3 }
   0xc   : > { %s747_s22 = scalar_select %p97_p7, %s662_s11, %s99_s18  }
   0xd   : > { %p158_p10 = pnand %p525_p6, %p157_p9 }
   0xe   : > { %p190_p11 = scmp.lt.s32.totalorder (!%p158_p10), %s666_s12, 1  ;;  %s187_s4 = sand.u32 (!%p158_p10), 1, %s658_s10  }
   0xf   : > { %161 = sbr.rel (%p158_p10) target bundleno = 239 (0xef), region = 28  ;;  %s429_s7 = scalar_lea.hbm (!%p158_p10), %s802_s2, %s666_s12 }
  0x10   : > { %s188_s8 = scalar_lea.vmem (!%p158_p10), [#allocation4], %s187_s4  ;;  %s433_s16 = sshll.u32 (!%p158_p10), %s429_s7, 4  ;;  %s434_s16 = int_to_ptr.hbm [resolvable:$true] %s433_s16 }
  0x11   : > { %s431_s15 = sshll.u32 (!%p158_p10), %s188_s8, 4  ;;  %s420_s18 = scalar_lea.sflag (!%p158_p10), [#allocation5], %s187_s4  ;;  %s432_s15 = int_to_ptr.vmem [resolvable:$true] %s431_s15 }
  0x12   : > { %s610_s20 = sshra.s32 (!%p158_p10), %s434_s16, 4  ;;  %s616_s26 = scalar_lea.hbm (!%p158_p10), %s802_s2, 2  ;;  %s611_s20 = int_to_ptr.hbm [resolvable:$true] %s610_s20 }
  0x13   : > { %p617_p1 = scmp.lt.s32.totalorder (!%p158_p10), %s611_s20, %s802_s2 }
  0x14   : > { %v676_v0 = vmov 0   ;;  %s751_s23 = scalar_select %p190_p11, %s666_s12, 1  ;;  %v677_v9 = vmov 1   ;;  %v678_v16 = vmov -inf  }
  0x15   : > { %591 = vset.pattern.permute.xlu1 %v676_v0  ;;  %211 = vst [vmem:[#allocation3] sm:$0x1] %v676_v0  ;;  %590 = vset.pattern.permute.xlu0 %v676_v0 }
  0x16   : > { %592 = vset.pattern.permute.xlu2 %v676_v0  ;;  %s531_s24 = sshll.u32 %s751_s23, 6  ;;  %210 = vst [vmem:[#allocation2] sm:$0x1] %v678_v16  ;;  %s528_s28 = sshll.u32 %s751_s23, 1 }
  0x17   : > { %s197_s27 = scalar_lea.vmem %s800_s0, %s531_s24  ;;  %s205_s3 = scalar_lea.vmem %s801_s1, %s528_s28 }
  0x18   : > { %v214_v1 = vld [vmem:[%s197_s27 + $0x10] sm:$0xff]  ;;  %v212_v2 = vld [vmem:[%s197_s27] sm:$0xff]  ;;  %v215_v4 = vld [vmem:[%s197_s27 + $0x18] sm:$0xff]  ;;  %s612_s23 = scalar_lea.hbm %s611_s20, 1 }
  0x19   : > { %233 = vperm.xlu1 %591, %v214_v1   ;;  %223 = vperm.xlu0 %590, %v212_v2   ;;  %v216_v3 = vld [vmem:[%s197_s27 + $0x20] sm:$0xff]  ;;  %v213_v5 = vld [vmem:[%s197_s27 + $0x8] sm:$0xff]  ;;  %v219_v7 = vld [vmem:[%s197_s27 + $0x38] sm:$0xff]  ;;  %p613_p12 = scmp.ne.s32.totalorder %s611_s20, %s612_s23  ;;  %p618_p2 = scmp.lt.s32.totalorder %s616_s26, %s612_s23 }
  0x1a   : > { %243 = vperm.xlu2 %592, %v216_v3   ;;  %v217_v6 = vld [vmem:[%s197_s27 + $0x28] sm:$0xff]  ;;  %v218_v8 = vld [vmem:[%s197_s27 + $0x30] sm:$0xff]  ;;  %v220_v23 = vld [vmem:[%s205_s3] sm:$0x3] }
  0x1b   : > { %v261_v24 = vperm.slane %v220_v23, 0  ;;  %v318_v25 = vperm.slane %v220_v23, 1  ;;  %p614_p13 = pnand %p613_p12, %p734_p4  ;;  %p619_p3 = por %p618_p2, %p617_p1 }
  0x1d   : > { %p615_p0 = pneg %p614_p13 }
  0x1f   : > { %p620_p5 = pnand %p619_p3, %p615_p0 }
  0x21   : > { %238 = vperm.xlu1 %591, %v215_v4   ;;  %228 = vperm.xlu0 %590, %v213_v5  }
  0x22   : > { %248 = vperm.xlu2 %592, %v217_v6  }
  0x29   : > { %258 = vperm.xlu1 %591, %v219_v7   ;;  %253 = vperm.xlu0 %590, %v218_v8  }
  0x2a   : > { %593 = vset.pattern.permute.xlu2 %v677_v9 }
  0x2b   : > { %287 = vperm.xlu2 %593, %v212_v2  }
  0x31   : > { %595 = vset.pattern.permute.xlu1 %v677_v9  ;;  %594 = vset.pattern.permute.xlu0 %v677_v9 }
  0x32   : > { %295 = vperm.xlu1 %595, %v214_v1   ;;  %291 = vperm.xlu0 %594, %v213_v5  }
  0x33   : > { %299 = vperm.xlu2 %593, %v215_v4  }
  0x3a   : > { %303 = vperm.xlu1 %595, %v216_v3   ;;  %311 = vperm.xlu0 %594, %v218_v8  }
  0x3b   : > { %307 = vperm.xlu2 %593, %v217_v6  }
  0x42   : > { %315 = vperm.xlu1 %595, %v219_v7  }
  0x74   : > { %v244_v10 = vpop.permute.xlu2 %243 }
  0x75   : > { %v266_v26 = vsub.f32 %v244_v10, %v261_v24 }
  0x77   : > { %v274_v36 = vmul.f32 %v266_v26, %v266_v26 }
  0x79   : > { %v282_v51 = vsub.f32 0.0, %v274_v36 }
  0x7c   : > { %v249_v13 = vpop.permute.xlu2 %248 }
  0x7d   : > { %v267_v28 = vsub.f32 %v249_v13, %v261_v24 }
  0x7f   : > { %v275_v40 = vmul.f32 %v267_v28, %v267_v28 }
  0x81   : > { %v283_v55 = vsub.f32 0.0, %v275_v40  ;;  %v407_v40 = vld [vmem:[#allocation2] sm:$0x1] }
  0x85   : > { %v288_v17 = vpop.permute.xlu2 %287 }
  0x86   : > { %v319_v37 = vsub.f32 %v288_v17, %v318_v25 }
  0x88   : > { %v327_v52 = vmul.f32 %v319_v37, %v319_v37 }
  0x8b   : > { %v234_v11 = vpop.permute.xlu1 %233  ;;  %v224_v12 = vpop.permute.xlu0 %223 }
  0x8c   : > { %v262_v27 = vsub.f32 %v224_v12, %v261_v24  ;;  %v264_v38 = vsub.f32 %v234_v11, %v261_v24 }
  0x8d   : > { %v300_v20 = vpop.permute.xlu2 %299 }
  0x8e   : > { %v270_v39 = vmul.f32 %v262_v27, %v262_v27  ;;  %v322_v44 = vsub.f32 %v300_v20, %v318_v25  ;;  %v272_v53 = vmul.f32 %v264_v38, %v264_v38 }
  0x90   : > { %v278_v54 = vsub.f32 0.0, %v270_v39  ;;  %v330_v59 = vmul.f32 %v322_v44, %v322_v44  ;;  %v280_v4 = vsub.f32 0.0, %v272_v53 }
  0x92   : > { %v335_v5 = vsub.f32 %v278_v54, %v327_v52 }
  0x93   : > { %v239_v14 = vpop.permute.xlu1 %238  ;;  %v229_v15 = vpop.permute.xlu0 %228 }
  0x94   : > { %v265_v29 = vsub.f32 %v239_v14, %v261_v24  ;;  %v263_v30 = vsub.f32 %v229_v15, %v261_v24 }
  0x95   : > { %v308_v33 = vpop.permute.xlu2 %307 }
  0x96   : > { %v273_v45 = vmul.f32 %v265_v29, %v265_v29  ;;  %v271_v46 = vmul.f32 %v263_v30, %v263_v30  ;;  %v324_v47 = vsub.f32 %v308_v33, %v318_v25 }
  0x98   : > { %v281_v60 = vsub.f32 0.0, %v273_v45  ;;  %v279_v61 = vsub.f32 0.0, %v271_v46  ;;  %v332_v62 = vmul.f32 %v324_v47, %v324_v47 }
  0x9a   : > { %v338_v10 = vsub.f32 %v281_v60, %v330_v59  ;;  %v340_v11 = vsub.f32 %v283_v55, %v332_v62 }
  0x9b   : > { %v259_v18 = vpop.permute.xlu1 %258  ;;  %v254_v19 = vpop.permute.xlu0 %253 }
  0x9c   : > { %v268_v34 = vsub.f32 %v254_v19, %v261_v24  ;;  %v269_v41 = vsub.f32 %v259_v18, %v261_v24 }
  0x9e   : > { %v276_v48 = vmul.f32 %v268_v34, %v268_v34  ;;  %v277_v56 = vmul.f32 %v269_v41, %v269_v41 }
  0xa0   : > { %v284_v0 = vsub.f32 0.0, %v276_v48  ;;  %v285_v6 = vsub.f32 0.0, %v277_v56 }
  0xa4   : > { %v296_v21 = vpop.permute.xlu1 %295  ;;  %v292_v22 = vpop.permute.xlu0 %291 }
  0xa5   : > { %v320_v42 = vsub.f32 %v292_v22, %v318_v25  ;;  %v321_v49 = vsub.f32 %v296_v21, %v318_v25  ;;  %v344_v22 = vlaneseq }
  0xa7   : > { %v328_v57 = vmul.f32 %v320_v42, %v320_v42  ;;  %v329_v1 = vmul.f32 %v321_v49, %v321_v49 }
  0xa9   : > { %v336_v7 = vsub.f32 %v279_v61, %v328_v57  ;;  %v337_v12 = vsub.f32 %v280_v4, %v329_v1 }
  0xab   : > { %v354_v15 = vmax.f32 %v336_v7, %v340_v11 }
  0xac   : > { %v304_v31 = vpop.permute.xlu1 %303  ;;  %v312_v32 = vpop.permute.xlu0 %311 }
  0xad   : > { %v323_v35 = vsub.f32 %v304_v31, %v318_v25  ;;  %v325_v43 = vsub.f32 %v312_v32, %v318_v25 }
  0xaf   : > { %v331_v50 = vmul.f32 %v323_v35, %v323_v35  ;;  %v333_v58 = vmul.f32 %v325_v43, %v325_v43 }
  0xb1   : > { %v339_v2 = vsub.f32 %v282_v51, %v331_v50  ;;  %v341_v8 = vsub.f32 %v284_v0, %v333_v58  ;;  %v408_v58 = vld [vmem:[#allocation3] sm:$0x1] }
  0xb3   : > { %v353_v13 = vmax.f32 %v335_v5, %v339_v2  ;;  %v355_v16 = vmax.f32 %v337_v12, %v341_v8 }
  0xb4   : > { %v316_v63 = vpop.permute.xlu1 %315 }
  0xb5   : > { %v326_v3 = vsub.f32 %v316_v63, %v318_v25  ;;  %v357_v18 = vmax.f32 %v353_v13, %v354_v15  ;;  %v345_v25 = vshrl.u32 %v344_v22, 7 }
  0xb7   : > { %v334_v9 = vmul.f32 %v326_v3, %v326_v3  ;;  %v346_v28 = vadd.s32 8, %v345_v25  ;;  %v347_v29 = vadd.s32 16, %v345_v25  ;;  %v348_v30 = vadd.s32 24, %v345_v25 }
  0xb8   : > { %v349_v32 = vadd.s32 32, %v345_v25  ;;  %v350_v33 = vadd.s32 40, %v345_v25  ;;  %v351_v34 = vadd.s32 48, %v345_v25  ;;  %v352_v35 = vadd.s32 56, %v345_v25 }
  0xb9   : > { %v342_v14 = vsub.f32 %v285_v6, %v334_v9 }
  0xbb   : > { %v356_v17 = vmax.f32 %v338_v10, %v342_v14 }
  0xbd   : > { %v358_v19 = vmax.f32 %v355_v16, %v356_v17 }
  0xbf   : > { %v359_v20 = vmax.f32 %v357_v18, %v358_v19 }
  0xc1   : > { %v360_v21 = vrot.slane %v359_v20, 4 }
  0xc3   : > { %v361_v23 = vmax.f32 %v359_v20, %v360_v21 }
  0xc5   : > { %v362_v24 = vrot.slane %v361_v23, 2 }
  0xc7   : > { %v363_v26 = vmax.f32 %v361_v23, %v362_v24 }
  0xc9   : > { %v364_v27 = vrot.slane %v363_v26, 1 }
  0xcb   : > { %v365_v31 = vmax.f32 %v363_v26, %v364_v27 }
  0xcd   : > { %vm366_vm0 = vcmp.eq.f32.partialorder %v335_v5, %v365_v31  ;;  %vm367_vm1 = vcmp.eq.f32.partialorder %v336_v7, %v365_v31  ;;  %vm368_vm2 = vcmp.eq.f32.partialorder %v337_v12, %v365_v31  ;;  %vm369_vm3 = vcmp.eq.f32.partialorder %v338_v10, %v365_v31 }
  0xce   : > { %vm370_vm4 = vcmp.eq.f32.partialorder %v339_v2, %v365_v31  ;;  %vm371_vm5 = vcmp.eq.f32.partialorder %v340_v11, %v365_v31  ;;  %vm372_vm6 = vcmp.eq.f32.partialorder %v341_v8, %v365_v31  ;;  %vm373_vm7 = vcmp.eq.f32.partialorder %v342_v14, %v365_v31 }
  0xcf   : > { %v374_v36 = vsel %vm366_vm0, %v345_v25, 1073741824  ;;  %v375_v37 = vsel %vm367_vm1, %v346_v28, 1073741824  ;;  %v376_v38 = vsel %vm368_vm2, %v347_v29, 1073741824  ;;  %v377_v39 = vsel %vm369_vm3, %v348_v30, 1073741824 }
  0xd0   : > { %v378_v41 = vsel %vm370_vm4, %v349_v32, 1073741824  ;;  %v379_v42 = vsel %vm371_vm5, %v350_v33, 1073741824  ;;  %v380_v43 = vsel %vm372_vm6, %v351_v34, 1073741824  ;;  %v381_v44 = vsel %vm373_vm7, %v352_v35, 1073741824 }
  0xd1   : > { %vm382_vm8 = vcmp.lt.s32.totalorder %v374_v36, %v378_v41  ;;  %vm384_vm9 = vcmp.lt.s32.totalorder %v375_v37, %v379_v42  ;;  %vm386_vm10 = vcmp.lt.s32.totalorder %v376_v38, %v380_v43  ;;  %vm388_vm11 = vcmp.lt.s32.totalorder %v377_v39, %v381_v44 }
  0xd2   : > { %v383_v45 = vsel %vm382_vm8, %v374_v36, %v378_v41  ;;  %v385_v46 = vsel %vm384_vm9, %v375_v37, %v379_v42  ;;  %v387_v47 = vsel %vm386_vm10, %v376_v38, %v380_v43  ;;  %v389_v48 = vsel %vm388_vm11, %v377_v39, %v381_v44 }
  0xd3   : > { %vm390_vm12 = vcmp.lt.s32.totalorder %v383_v45, %v385_v46  ;;  %vm392_vm13 = vcmp.lt.s32.totalorder %v387_v47, %v389_v48  ;;  %vm409_vm14 = vcmp.gt.f32.partialorder %v365_v31, %v407_v40 }
  0xd4   : > { %v391_v49 = vsel %vm390_vm12, %v383_v45, %v385_v46  ;;  %v393_v50 = vsel %vm392_vm13, %v387_v47, %v389_v48  ;;  %v410_v51 = vsel %vm409_vm14, %v365_v31, %v407_v40 }
  0xd5   : > { %vm394_vm15 = vcmp.lt.s32.totalorder %v391_v49, %v393_v50  ;;  %411 = vst [vmem:[#allocation2] sm:$0x1] %v410_v51 }
  0xd6   : > { %v395_v52 = vsel %vm394_vm15, %v391_v49, %v393_v50 }
  0xd7   : > { %v396_v53 = vrot.slane %v395_v52, 4 }
  0xd9   : > { %vm397_vm0 = vcmp.lt.s32.totalorder %v395_v52, %v396_v53 }
  0xda   : > { %v398_v54 = vsel %vm397_vm0, %v395_v52, %v396_v53 }
  0xdb   : > { %v399_v55 = vrot.slane %v398_v54, 2 }
  0xdd   : > { %vm400_vm1 = vcmp.lt.s32.totalorder %v398_v54, %v399_v55 }
  0xde   : > { %v401_v56 = vsel %vm400_vm1, %v398_v54, %v399_v55 }
  0xdf   : > { %v402_v57 = vrot.slane %v401_v56, 1 }
  0xe1   : > { %vm403_vm2 = vcmp.lt.s32.totalorder %v401_v56, %v402_v57 }
  0xe2   : > { %v404_v59 = vsel %vm403_vm2, %v401_v56, %v402_v57 }
  0xe3   : > { %v412_v60 = vsel %vm409_vm14, %v404_v59, %v408_v58 }
  0xe4   : > { %413 = vst [vmem:[#allocation3] sm:$0x1] %v412_v60 }
  0xeb   : > { %v417_v61 = vld [vmem:[#allocation3] sm:$0x1] }
  0xec   : > { %418 = vst [vmem:[%s188_s8] sm:$0x1] %v417_v61 }
  0xed   : > { %623 = shalt.err (!%p620_p5)
}
  0xee   : > { %532 = dma.vmem_to_hbm [thread:$0]  (%p734_p4), %s432_s15, 16, %s434_s16, %s420_s18  }
  0xef PF: > { %p538_p6 = scmp.ge.s32.totalorder %s674_s14, 2  ;;  %s445_s28 = sand.u32 1, %s654_s9  }
  0xf0   : > { %s446_s29 = scalar_lea.sflag [#allocation5], %s445_s28 }
  0xf1   : > { %p535_p7 = pnand %p538_p6, %p741_p8 }
  0xf3   : > { %p536_p9 = pneg %p535_p7 }
  0xf5   : > { %649 = dma.done.wait (%p536_p9), %s446_s29, 16  }
  0xf6   : > { %651 = vsyncadd (%p536_p9), %s446_s29, 4294967280  ;;  %s15_s14 = sadd.s32 1, %s674_s14   ;;  %s805_s9 = smov %s658_s10 }
  0xf7   : > { %p12_p10 = scmp.ge.s32.totalorder %s15_s14, 4   ;;  %s806_s10 = smov %s662_s11 }
  0xf8   : > { %s807_s11 = smov %s747_s22  ;;  %s808_s12 = smov %s670_s13 }
  0xf9   : > { %s809_s13 = smov %s811_s17  ;;  %14 = sbr.rel (!%p12_p10) target bundleno = 4 (0x4), region = 74 }
  0xfe   :  { %451 = vsyncpa [#allocation5], 1 }
  0xff   :  { %453 = vsyncpa [#allocation5 + $0x1], 1 }

</bundles_post_ra>
